<compile_context>
chip_gen: v7x
topology: tpu7x:2x2x1
jax: 0.10.0
libtpu: 0.0.40
codegen_flags: <defaults>
</compile_context>

<pallas_src>
import functools
import math

import jax
import jax.numpy as jnp
from jax.experimental import pallas as pl
from jax.experimental.pallas import tpu as pltpu

NUM_GROUPS = 16
GN_EPS = 1e-5

# TODO(synk): only the add_batch_norm=True branch of the module is implemented
# (the bias-only branch is a trivial `gates + b` and is not exercised by the
# module's default config).


def _round_up(n, m):
    return ((n + m - 1) // m) * m


def _cdiv(a, b):
    return -(-a // b)


def _tpu_generation():
    try:
        kind = jax.devices()[0].device_kind.lower()
    except Exception:
        return None
    if "v5 lite" in kind or "v5e" in kind or "v5lite" in kind:
        return 5
    if "v6" in kind or "trillium" in kind:
        return 6
    if "v7" in kind or "7x" in kind:
        return 7
    return None


def _vmem_capacity_bytes(gen):
    try:
        cap = int(pltpu.get_tpu_info().vmem_capacity_bytes)
        if cap > 0:
            return cap
    except Exception:
        pass
    if gen in (5, 6):
        return 128 << 20
    return 64 << 20                     # conservative (v7x / unknown)


def _pick_col_tile(dim, group_size):
    """Largest tn <= 1024 that is a multiple of (group_size, 128) and divides dim."""
    step = (group_size * 128) // math.gcd(group_size, 128)   # lcm
    if step > dim or dim % step:
        return None
    best = None
    t = step
    while t <= dim:
        if dim % t == 0:
            if t <= 1024 or best is None:
                best = t
            if t > 1024:
                break
        t += step
    return best


def _gating_kernel(x_ref, w_ref, p_ref, eg_ref, em_ref, beta_ref, o_ref,
                   *, tn, centered, approx):
    dim = x_ref.shape[1]

    x = x_ref[...]                                             # (bb, dim) native dtype
    w = w_ref[...]                                             # (dim, tn) f32 or bf16
    lhs = x if x.dtype == w.dtype else x.astype(w.dtype)       # single cast (if any)

    # Main matmul on the MXU, f32 accumulate.
    gates = jnp.dot(lhs, w, preferred_element_type=jnp.float32)        # (bb, tn)

    p = p_ref[...]                                             # (tn, G)  1/group_size pooling
    eg = eg_ref[...]                                           # (G, tn)  expand * gamma
    beta = beta_ref[...]                                       # (1, tn)
    bb = gates.shape[0]

    if centered:
        # Torch-GroupNorm numerics: centered variance (4 thin matmuls).
        em = em_ref[...]                                       # (G, tn) 0/1 expand
        mean_g = jnp.dot(gates, p, preferred_element_type=jnp.float32)     # (bb, G)
        mean = jnp.dot(mean_g, em, preferred_element_type=jnp.float32)     # (bb, tn)
        d = gates - mean
        var_g = jnp.dot(d * d, p, preferred_element_type=jnp.float32)      # (bb, G)
        rstd_g = jax.lax.rsqrt(var_g + GN_EPS)
        scale = jnp.dot(rstd_g, eg, preferred_element_type=jnp.float32)    # gamma * rstd
        gn = d * scale + beta
    else:
        # Fast path: 2 stacked matmuls (uncentered variance; em unused).
        pooled = jnp.dot(jnp.concatenate([gates, gates * gates], axis=0), p,
                         preferred_element_type=jnp.float32)   # (2bb, G)
        mean_g = pooled[:bb]
        var_g = jnp.maximum(pooled[bb:] - mean_g * mean_g, 0.0)
        rstd_g = jax.lax.rsqrt(var_g + GN_EPS)
        se = jnp.dot(jnp.concatenate([rstd_g, -mean_g * rstd_g], axis=0), eg,
                     preferred_element_type=jnp.float32)       # (2bb, tn)
        gn = gates * se[:bb] + se[bb:] + beta

    # Columns of x for this tile (full x is already in VMEM for the matmul LHS).
    if tn == dim:
        xc = x
    else:
        start = pl.multiple_of(pl.program_id(1) * tn, 128)
        xc = x_ref[:, pl.ds(start, tn)]

    # sigmoid: exp on the EUP; reciprocal optionally on the EUP too (approx).
    e = jnp.exp(-gn)
    if approx:
        sig = pl.reciprocal(1.0 + e, approx=True)
    else:
        sig = 1.0 / (1.0 + e)

    o_ref[...] = (xc.astype(jnp.float32) * sig).astype(o_ref.dtype)


def gating_context(x, gating_weights, gamma, beta, *,
                   block_b=None, block_n=None, use_bf16_matmul=None,
                   centered_variance=True, approx_sigmoid=True):
    """x: (B, dim) -> (B, dim). Fused matmul + GroupNorm(16) + sigmoid gate."""
    B, dim = x.shape
    assert dim % NUM_GROUPS == 0, "dim must be divisible by 16 (GroupNorm groups)"
    gs = dim // NUM_GROUPS

    gen = _tpu_generation()
    vmem_cap = _vmem_capacity_bytes(gen)
    budget = min(vmem_cap - (8 << 20), 100 << 20)     # ~56 MiB on v7x, ~100 MiB v5e/v6e

    # v5e MXU is bf16-native: f32 matmul decomposes into multiple passes.
    if use_bf16_matmul is None:
        use_bf16_matmul = (gen == 5)
    w = gating_weights.astype(jnp.bfloat16 if use_bf16_matmul else jnp.float32)

    # Batch tile: 256 fills the 256-row MXU on v6e/v7x, 128 on v5e/unknown.
    sub = {4: 8, 2: 16, 1: 32}.get(x.dtype.itemsize, 8)
    if block_b is None:
        block_b = 256 if gen in (6, 7) else 128
    bb = max(sub, min(_round_up(block_b, sub), _round_up(max(B, 1), sub)))
    n_i = _cdiv(B, bb)            # ragged tail handled by masked OOB reads/writes

    # Column (output) tiling: stream W when a resident copy would pressure VMEM
    # (the v7x 64 MiB case).  tn is a multiple of the group size so GroupNorm
    # statistics stay local to each column tile.
    w_res_bytes = dim * dim * w.dtype.itemsize
    if block_n is not None:
        tn = block_n if 0 < block_n < dim else None
    else:
        tn = _pick_col_tile(dim, gs) if w_res_bytes > max(8 << 20, budget // 3) else None
    if tn is not None and (tn % gs or tn % 128 or dim % tn):
        tn = None
    n_j = 1 if tn is None else dim // tn
    if tn is None:
        tn = dim

    # Thin group pooling / expand matrices (dim x 16, not dim x dim).
    gid = jnp.arange(dim) // gs
    onehot = (gid[:, None] == jnp.arange(NUM_GROUPS)[None, :]).astype(jnp.float32)
    p = onehot / float(gs)                                   # (dim, G) -> group mean
    em = onehot.T                                            # (G, dim) 0/1 expand
    eg = em * gamma.astype(jnp.float32)[None, :]             # fold GN gamma in
    beta2 = beta.reshape(1, dim).astype(jnp.float32)

    resident = dict(pipeline_mode=pl.Buffered(1)) if n_j == 1 else {}
    x_extra = (dict(pipeline_mode=pl.Buffered(3))
               if (n_j == 1 and dim <= 512 and n_i >= 3) else {})

    # VMEM footprint -> explicit limit only when beyond the default scoped limit,
    # clamped to the generation's physical capacity minus headroom.
    f32b = 4
    nbuf_const = 1 if n_j == 1 else 2
    nbuf_x = 3 if x_extra else 2
    est = (nbuf_const * (dim * tn * w.dtype.itemsize + (3 * NUM_GROUPS + 1) * tn * f32b)
           + nbuf_x * bb * dim * x.dtype.itemsize
           + 2 * bb * tn * x.dtype.itemsize
           + 10 * bb * tn * f32b
           + bb * dim * w.dtype.itemsize)
    default_scoped = (16 << 20) if (gen == 5 or gen is None) else (32 << 20)
    vmem_limit = None
    if est > default_scoped:
        vmem_limit = max(min(int(est * 1.25) + (2 << 20), budget), 1 << 20)

    rows = n_i * bb
    gn_mm = 4 if centered_variance else 2
    cost = pl.CostEstimate(
        flops=int(2 * rows * dim * dim + gn_mm * 2 * rows * dim * NUM_GROUPS
                  + 10 * rows * dim),
        transcendentals=int(rows * dim + rows * NUM_GROUPS),
        bytes_accessed=int(2 * B * dim * x.dtype.itemsize
                           + dim * dim * w.dtype.itemsize * (n_i if n_j > 1 else 1)
                           + (3 * NUM_GROUPS + 1) * dim * f32b))

    kernel = functools.partial(_gating_kernel, tn=tn,
                               centered=centered_variance, approx=approx_sigmoid)

    out = pl.pallas_call(
        kernel,
        out_shape=jax.ShapeDtypeStruct((B, dim), x.dtype),
        grid_spec=pltpu.PrefetchScalarGridSpec(
            num_scalar_prefetch=0,
            grid=(n_i, n_j),
            in_specs=[
                pl.BlockSpec((bb, dim), lambda i, j: (i, 0), **x_extra),          # x
                pl.BlockSpec((dim, tn), lambda i, j: (0, j), **resident),         # W
                pl.BlockSpec((tn, NUM_GROUPS), lambda i, j: (j, 0), **resident),  # pool
                pl.BlockSpec((NUM_GROUPS, tn), lambda i, j: (0, j), **resident),  # expand*gamma
                pl.BlockSpec((NUM_GROUPS, tn), lambda i, j: (0, j), **resident),  # expand (0/1)
                pl.BlockSpec((1, tn), lambda i, j: (0, j), **resident),           # beta
            ],
            out_specs=pl.BlockSpec((bb, tn), lambda i, j: (i, j)),
        ),
        compiler_params=pltpu.CompilerParams(
            dimension_semantics=("parallel", "parallel"),
            vmem_limit_bytes=vmem_limit),
        cost_estimate=cost,
    )(x, w, p, eg, em, beta2)

    return out


def gating_context_ref(x, gating_weights, gamma, beta):
    """Pure-JAX reference matching the PyTorch forward (add_batch_norm=True)."""
    B, dim = x.shape
    gs = dim // NUM_GROUPS
    gates = x.astype(jnp.float32) @ gating_weights.astype(jnp.float32)
    g = gates.reshape(B, NUM_GROUPS, gs)
    mean = g.mean(axis=-1, keepdims=True)
    var = g.var(axis=-1, keepdims=True)
    norm = ((g - mean) / jnp.sqrt(var + GN_EPS)).reshape(B, dim)
    gn = norm * gamma[None, :] + beta[None, :]
    return (x * jax.nn.sigmoid(gn)).astype(x.dtype)


if __name__ == "__main__":
    key = jax.random.PRNGKey(0)
    kx, kw, kg, kb, kx2, kw2, kg2, kb2, kx3 = jax.random.split(key, 9)

    dim = 128
    gating_weights = jax.random.normal(kw, (dim, dim), jnp.float32) / math.sqrt(dim)
    gamma = 1.0 + 0.1 * jax.random.normal(kg, (dim,), jnp.float32)
    beta = 0.1 * jax.random.normal(kb, (dim,), jnp.float32)

    # 1) exact path: f32 MXU, centered GroupNorm variance, exact divide.
    x1 = jax.random.normal(kx, (8, dim), jnp.float32)
    out1 = jax.block_until_ready(gating_context(
        x1, gating_weights, gamma, beta,
        use_bf16_matmul=False, centered_variance=True, approx_sigmoid=False))
    ref1 = gating_context_ref(x1, gating_weights, gamma, beta)
    assert out1.shape == x1.shape
    assert jnp.allclose(out1, ref1, atol=1e-4, rtol=1e-4), "f32 mismatch vs reference"

    # 2) default per-generation config (auto bb / auto bf16 on v5e / approx sigmoid).
    out2 = jax.block_until_ready(gating_context(x1, gating_weights, gamma, beta))
    assert jnp.allclose(out2, ref1, atol=5e-2, rtol=5e-2), "default-config mismatch"

    # 3) ragged batch (masked tail tile instead of a jnp.pad copy).
    x2 = jax.random.normal(kx2, (20, dim), jnp.float32)
    out3 = jax.block_until_ready(gating_context(
        x2, gating_weights, gamma, beta, use_bf16_matmul=False, approx_sigmoid=False))
    ref2 = gating_context_ref(x2, gating_weights, gamma, beta)
    assert out3.shape == x2.shape
    assert jnp.allclose(out3, ref2, atol=1e-4, rtol=1e-4), "ragged-batch mismatch"

    # 4) fast GroupNorm (2 stacked helper matmuls, uncentered variance).
    out4 = jax.block_until_ready(gating_context(
        x1, gating_weights, gamma, beta,
        use_bf16_matmul=False, centered_variance=False, approx_sigmoid=False))
    assert jnp.allclose(out4, ref1, atol=5e-4, rtol=5e-4), "fast-GN mismatch"

    # 5) bf16 weights into the MXU (v5e default / v6e-v7x fast path).
    out5 = jax.block_until_ready(gating_context(
        x1, gating_weights, gamma, beta, use_bf16_matmul=True, approx_sigmoid=False))
    assert jnp.allclose(out5, ref1, atol=5e-2, rtol=5e-2), "bf16 mismatch vs reference"

    # 6) column-tiled (streamed-W) path, forced small — the large-dim/v7x config.
    dim2 = 256
    w2 = jax.random.normal(kw2, (dim2, dim2), jnp.float32) / math.sqrt(dim2)
    g2 = 1.0 + 0.1 * jax.random.normal(kg2, (dim2,), jnp.float32)
    b2 = 0.1 * jax.random.normal(kb2, (dim2,), jnp.float32)
    x3 = jax.random.normal(kx3, (8, dim2), jnp.float32)
    out6 = jax.block_until_ready(gating_context(
        x3, w2, g2, b2, block_n=128, use_bf16_matmul=False, approx_sigmoid=False))
    ref3 = gating_context_ref(x3, w2, g2, b2)
    assert jnp.allclose(out6, ref3, atol=1e-4, rtol=1e-4), "column-tiled mismatch"

    print("KERNEL_OK")
</pallas_src>

<mosaic_0001>
module attributes {stable_mosaic.version = 11 : i64} {
  func.func @_gating_kernel(%arg0: i32, %arg1: i32, %arg2: memref<8x128xf32, #tpu.memory_space<vmem>>, %arg3: memref<128x128xf32, #tpu.memory_space<vmem>>, %arg4: memref<128x16xf32, #tpu.memory_space<vmem>>, %arg5: memref<16x128xf32, #tpu.memory_space<vmem>>, %arg6: memref<16x128xf32, #tpu.memory_space<vmem>>, %arg7: memref<1x128xf32, #tpu.memory_space<vmem>>, %arg8: memref<8x128xf32, #tpu.memory_space<vmem>>) attributes {dimension_semantics = [#tpu.dimension_semantics<parallel>, #tpu.dimension_semantics<parallel>], iteration_bounds = array<i64: 1, 1>, scalar_prefetch = 0 : i64, scratch_operands = 0 : i64, tpu.core_type = #tpu.core_type<tc>, window_params = [{transform_indices = @transform_0, window_bounds = array<i64: 8, 128>}, {pipeline_mode = #tpu.pipeline_mode<synchronous>, transform_indices = @transform_1, window_bounds = array<i64: 128, 128>}, {pipeline_mode = #tpu.pipeline_mode<synchronous>, transform_indices = @transform_2, window_bounds = array<i64: 128, 16>}, {pipeline_mode = #tpu.pipeline_mode<synchronous>, transform_indices = @transform_3, window_bounds = array<i64: 16, 128>}, {pipeline_mode = #tpu.pipeline_mode<synchronous>, transform_indices = @transform_4, window_bounds = array<i64: 16, 128>}, {pipeline_mode = #tpu.pipeline_mode<synchronous>, transform_indices = @transform_5, window_bounds = array<i64: 1, 128>}, {transform_indices = @transform_6, window_bounds = array<i64: 8, 128>}]} {
    %c0 = arith.constant 0 : index
    %c0_0 = arith.constant 0 : index
    %0 = vector.load %arg2[%c0, %c0_0] : memref<8x128xf32, #tpu.memory_space<vmem>>, vector<8x128xf32>
    %c0_1 = arith.constant 0 : index
    %c0_2 = arith.constant 0 : index
    %1 = vector.load %arg3[%c0_1, %c0_2] : memref<128x128xf32, #tpu.memory_space<vmem>>, vector<128x128xf32>
    %cst = arith.constant dense<0.000000e+00> : vector<8x128xf32>
    %2 = tpu.matmul %0, %1, %cst {dimension_numbers = #tpu.dot_dimension_numbers<[1], [0], [0], [1], [0, 0, 1, 1], [], []>} : vector<8x128xf32>, vector<128x128xf32>, vector<8x128xf32> -> vector<8x128xf32>
    %c0_3 = arith.constant 0 : index
    %c0_4 = arith.constant 0 : index
    %3 = vector.load %arg4[%c0_3, %c0_4] : memref<128x16xf32, #tpu.memory_space<vmem>>, vector<128x16xf32>
    %c0_5 = arith.constant 0 : index
    %c0_6 = arith.constant 0 : index
    %4 = vector.load %arg5[%c0_5, %c0_6] : memref<16x128xf32, #tpu.memory_space<vmem>>, vector<16x128xf32>
    %c0_7 = arith.constant 0 : index
    %c0_8 = arith.constant 0 : index
    %5 = vector.load %arg7[%c0_7, %c0_8] : memref<1x128xf32, #tpu.memory_space<vmem>>, vector<1x128xf32>
    %c0_9 = arith.constant 0 : index
    %c0_10 = arith.constant 0 : index
    %6 = vector.load %arg6[%c0_9, %c0_10] : memref<16x128xf32, #tpu.memory_space<vmem>>, vector<16x128xf32>
    %cst_11 = arith.constant dense<0.000000e+00> : vector<8x16xf32>
    %7 = tpu.matmul %2, %3, %cst_11 {dimension_numbers = #tpu.dot_dimension_numbers<[1], [0], [0], [1], [0, 0, 1, 1], [], []>} : vector<8x128xf32>, vector<128x16xf32>, vector<8x16xf32> -> vector<8x16xf32>
    %cst_12 = arith.constant dense<0.000000e+00> : vector<8x128xf32>
    %8 = tpu.matmul %7, %6, %cst_12 {dimension_numbers = #tpu.dot_dimension_numbers<[1], [0], [0], [1], [0, 0, 1, 1], [], []>} : vector<8x16xf32>, vector<16x128xf32>, vector<8x128xf32> -> vector<8x128xf32>
    %9 = arith.subf %2, %8 : vector<8x128xf32>
    %10 = arith.mulf %9, %9 : vector<8x128xf32>
    %cst_13 = arith.constant dense<0.000000e+00> : vector<8x16xf32>
    %11 = tpu.matmul %10, %3, %cst_13 {dimension_numbers = #tpu.dot_dimension_numbers<[1], [0], [0], [1], [0, 0, 1, 1], [], []>} : vector<8x128xf32>, vector<128x16xf32>, vector<8x16xf32> -> vector<8x16xf32>
    %cst_14 = arith.constant 9.99999974E-6 : f32
    %12 = vector.broadcast %cst_14 : f32 to vector<8x16xf32>
    %13 = arith.addf %11, %12 : vector<8x16xf32>
    %14 = math.rsqrt %13 : vector<8x16xf32>
    %cst_15 = arith.constant dense<0.000000e+00> : vector<8x128xf32>
    %15 = tpu.matmul %14, %4, %cst_15 {dimension_numbers = #tpu.dot_dimension_numbers<[1], [0], [0], [1], [0, 0, 1, 1], [], []>} : vector<8x16xf32>, vector<16x128xf32>, vector<8x128xf32> -> vector<8x128xf32>
    %16 = arith.mulf %9, %15 : vector<8x128xf32>
    %17 = vector.broadcast %5 : vector<1x128xf32> to vector<8x128xf32>
    %18 = arith.addf %16, %17 : vector<8x128xf32>
    %cst_16 = arith.constant 0.000000e+00 : f32
    %19 = vector.broadcast %cst_16 : f32 to vector<8x128xf32>
    %20 = arith.subf %19, %18 : vector<8x128xf32>
    %21 = math.exp %20 : vector<8x128xf32>
    %cst_17 = arith.constant 1.000000e+00 : f32
    %22 = vector.broadcast %cst_17 : f32 to vector<8x128xf32>
    %23 = arith.addf %22, %21 : vector<8x128xf32>
    %cst_18 = arith.constant 1.000000e+00 : f32
    %24 = vector.broadcast %cst_18 : f32 to vector<8x128xf32>
    %25 = arith.divf %24, %23 : vector<8x128xf32>
    %26 = arith.mulf %0, %25 : vector<8x128xf32>
    %c0_19 = arith.constant 0 : index
    %c0_20 = arith.constant 0 : index
    %27 = vector.load %arg8[%c0_19, %c0_20] : memref<8x128xf32, #tpu.memory_space<vmem>>, vector<8x128xf32>
    tpu.vector_store %arg8[%c0_19, %c0_20], %26 {strides = array<i32>} : memref<8x128xf32, #tpu.memory_space<vmem>>, vector<8x128xf32>,
    return
  }
  func.func @transform_0(%arg0: i32, %arg1: i32) -> (i32, i32) {
    %c0_i32 = arith.constant 0 : i32
    %c0_i32_0 = arith.constant 0 : i32
    return %arg0, %c0_i32 : i32, i32
  }
  func.func @transform_1(%arg0: i32, %arg1: i32) -> (i32, i32) {
    %c0_i32 = arith.constant 0 : i32
    %c0_i32_0 = arith.constant 0 : i32
    return %c0_i32, %arg1 : i32, i32
  }
  func.func @transform_2(%arg0: i32, %arg1: i32) -> (i32, i32) {
    %c0_i32 = arith.constant 0 : i32
    %c0_i32_0 = arith.constant 0 : i32
    return %arg1, %c0_i32 : i32, i32
  }
  func.func @transform_3(%arg0: i32, %arg1: i32) -> (i32, i32) {
    %c0_i32 = arith.constant 0 : i32
    %c0_i32_0 = arith.constant 0 : i32
    return %c0_i32, %arg1 : i32, i32
  }
  func.func @transform_4(%arg0: i32, %arg1: i32) -> (i32, i32) {
    %c0_i32 = arith.constant 0 : i32
    %c0_i32_0 = arith.constant 0 : i32
    return %c0_i32, %arg1 : i32, i32
  }
  func.func @transform_5(%arg0: i32, %arg1: i32) -> (i32, i32) {
    %c0_i32 = arith.constant 0 : i32
    %c0_i32_0 = arith.constant 0 : i32
    return %c0_i32, %arg1 : i32, i32
  }
  func.func @transform_6(%arg0: i32, %arg1: i32) -> (i32, i32) {
    %c0_i32 = arith.constant 0 : i32
    return %arg0, %arg1 : i32, i32
  }
}

</mosaic_0001>

<bundles_post_ra>
// kernel: tpu_custom_call.1
= control target key start
LH: loop header
LB: loop body
LE: loop exit
PB: predicated region body
PF: predicated region fallthrough
CT: control target
= control target key end

     0   :  { %11 = vsyncpa [#allocation3], 0  ;;  %s1068_s0 = inlined_call_operand.hbm [shape: f32[8,128], index: 0, kind: input, shape index: {}]   ;;  %s1069_s1 = inlined_call_operand.vmem [shape: f32[128,128], index: 1, kind: input, shape index: {}]   ;;  %s1070_s2 = inlined_call_operand.vmem [shape: f32[128,16], index: 2, kind: input, shape index: {}]   ;;  %s1071_s3 = inlined_call_operand.vmem [shape: f32[16,128], index: 3, kind: input, shape index: {}]   ;;  %s1072_s4 = inlined_call_operand.hbm [shape: f32[16,128], index: 4, kind: input, shape index: {}]   ;;  %s1073_s5 = inlined_call_operand.vmem [shape: f32[1,128], index: 5, kind: input, shape index: {}]   ;;  %s1074_s6 = inlined_call_operand.hbm [shape: f32[8,128], index: 6, kind: output, shape index: {}]  }
   0x1   :  { %12 = vsyncpa [#allocation6], 0 }
   0x2   :  { %13 = vsyncpa [#allocation4], 0  ;;  %s823_s21 = smov [#allocation2]   ;;  %s824_s23 = smov [#allocation5]  }
   0x3   :  { %s20_s22 = sshll.u32 %s823_s21, 4  ;;  %s35_s24 = sshll.u32 %s824_s23, 4  ;;  %s21_s22 = int_to_ptr.vmem [resolvable:$true] %s20_s22  ;;  %s866_s24 = int_to_ptr.vmem [resolvable:$true] %s35_s24 }
   0x4   :  { %s751_s27 = scalar_lea.hbm %s1068_s0, 128 }
   0x5   :  { %p752_p0 = scmp.ne.s32.totalorder %s1068_s0, %s751_s27  ;;  %p755_p1 = scmp.lt.u32.totalorder %s751_s27, %s1068_s0 }
   0x7   :  { %p757_p2 = pnand %p755_p1, %p752_p0 }
   0x9   :  { %760 = shalt.err (!%p757_p2)
}
   0xa   :  { %s761_s8 = scalar_lea.vmem %s21_s22, 128  ;;  %p766_p4 = scmp.lt.s32.totalorder %s21_s22, %s21_s22 }
   0xb   :  { %p762_p3 = scmp.ne.s32.totalorder %s21_s22, %s761_s8  ;;  %p767_p5 = scmp.lt.s32.totalorder %s761_s8, %s761_s8 }
   0xd   :  { %p768_p6 = por %p767_p5, %p766_p4 }
   0xf   :  { %p769_p7 = pnand %p768_p6, %p762_p3 }
  0x11   :  { %772 = shalt.err (!%p769_p7)
}
  0x12   :  { %23 = dma.hbm_to_vmem [thread:$0]  %s1068_s0, 128, %s21_s22, [#allocation3]  }
  0x13   :  { %s773_s13 = scalar_lea.hbm %s1072_s4, 256 }
  0x14   :  { %p774_p8 = scmp.ne.s32.totalorder %s1072_s4, %s773_s13  ;;  %p777_p9 = scmp.lt.u32.totalorder %s773_s13, %s1072_s4 }
  0x16   :  { %p779_p10 = pnand %p777_p9, %p774_p8 }
  0x18   :  { %782 = shalt.err (!%p779_p10)
}
  0x19   :  { %s783_s18 = scalar_lea.vmem %s866_s24, 256  ;;  %p788_p12 = scmp.lt.s32.totalorder %s866_s24, %s866_s24 }
  0x1a   :  { %p784_p11 = scmp.ne.s32.totalorder %s866_s24, %s783_s18  ;;  %p789_p13 = scmp.lt.s32.totalorder %s783_s18, %s783_s18 }
  0x1c   :  { %p790_p0 = por %p789_p13, %p788_p12 }
  0x1e   :  { %p791_p1 = pnand %p790_p0, %p784_p11 }
  0x20   :  { %794 = shalt.err (!%p791_p1)
}
  0x21   :  { %s825_s0 = smov 128   ;;  %s826_s19 = smov 8  }
  0x22   :  { %41 = dma.hbm_to_vmem [thread:$0]  %s1072_s4, 256, %s866_s24, [#allocation6], %s825_s0, %s825_s0, %s826_s19  }
  0x23   :  { %817 = dma.done.wait [#allocation3], 128  }
  0x24   :  { %818 = vsyncadd [#allocation3], 4294967168 }
  0x25   :  { %819 = dma.done.wait [#allocation6], 256  }
  0x26   :  { %820 = vsyncadd [#allocation6], 4294967040  ;;  %v827_v0 = vmov 0.0|0.0   ;;  %vm828_vm0 = vmmov 0   ;;  %v829_v1 = vmov 0.0   ;;  %v51_v2 = vld [vmem:[%s1069_s1] sm:$0xff] }
  0x27   :  { %659 = vmatprep.subr.bf16.mxu0 %v827_v0  ;;  %572 = vmatprep.mubr.msk.f32.mxu0 %vm828_vm0, %v829_v1  ;;  %v52_v3 = vld [vmem:[%s1069_s1 + $0x8] sm:$0xff]  ;;  %v53_v4 = vld [vmem:[%s1069_s1 + $0x10] sm:$0xff]  ;;  %v54_v6 = vld [vmem:[%s1069_s1 + $0x18] sm:$0xff]  ;;  %vm228_vm1 = vcmask 130048  }
  0x28   :  { %683 = vmatprep.subr.bf16.mxu1 %v827_v0  ;;  %607 = vmatprep.mubr.msk.f32.mxu1 %vm828_vm0, %v829_v1  ;;  %v660_v5 = vpack.c.bf16 %v52_v3, %v51_v2  ;;  %v663_v7 = vpack.c.bf16 %v54_v6, %v53_v4  ;;  %v55_v8 = vld [vmem:[%s1069_s1 + $0x20] sm:$0xff]  ;;  %v56_v9 = vld [vmem:[%s1069_s1 + $0x28] sm:$0xff]  ;;  %v139_v12 = vld [vmem:[%s1070_s2 + $0x10] sm:$0xff] }
  0x29   :  { %v137_v10 = vld [vmem:[%s1070_s2] sm:$0xff]  ;;  %v138_v11 = vld [vmem:[%s1070_s2 + $0x8] sm:$0xff]  ;;  %v140_v13 = vld [vmem:[%s1070_s2 + $0x18] sm:$0xff]  ;;  %v666_v14 = vpack.c.bf16 %v56_v9, %v55_v8 }
  0x2a   :  { %661 = vmatpush3.bf16.msra.mxu0 %v660_v5  ;;  %v934_v15 = vpack.c.bf16 %v138_v11, %v137_v10  ;;  %v57_v16 = vld [vmem:[%s1069_s1 + $0x30] sm:$0xff]  ;;  %v58_v17 = vld [vmem:[%s1069_s1 + $0x38] sm:$0xff]  ;;  %v944_v18 = vpack.c.bf16 %v140_v13, %v139_v12  ;;  %v141_v19 = vld [vmem:[%s1070_s2 + $0x20] sm:$0xff] }
  0x2b   :  { %662 = vmatprep.subr.bf16.mxu0 %v827_v0  ;;  %v142_v20 = vld [vmem:[%s1070_s2 + $0x28] sm:$0xff]  ;;  %v669_v21 = vpack.c.bf16 %v58_v17, %v57_v16  ;;  %v59_v22 = vld [vmem:[%s1069_s1 + $0x40] sm:$0xff]  ;;  %v143_v25 = vld [vmem:[%s1070_s2 + $0x30] sm:$0xff] }
  0x2c   :  { %685 = vmatpush3.bf16.msra.mxu1 %v934_v15  ;;  %v60_v23 = vld [vmem:[%s1069_s1 + $0x48] sm:$0xff]  ;;  %v961_v24 = vpack.c.bf16 %v142_v20, %v141_v19  ;;  %v144_v26 = vld [vmem:[%s1070_s2 + $0x38] sm:$0xff]  ;;  %v61_v28 = vld [vmem:[%s1069_s1 + $0x50] sm:$0xff] }
  0x2d   :  { %686 = vmatprep.subr.bf16.mxu1 %v827_v0  ;;  %v672_v27 = vpack.c.bf16 %v60_v23, %v59_v22  ;;  %v62_v29 = vld [vmem:[%s1069_s1 + $0x58] sm:$0xff]  ;;  %v693_v30 = vpack.c.bf16 %v144_v26, %v143_v25  ;;  %v145_v31 = vld [vmem:[%s1070_s2 + $0x40] sm:$0xff]  ;;  %v146_v32 = vld [vmem:[%s1070_s2 + $0x48] sm:$0xff] }
  0x2e   :  { %664 = vmatpush3.bf16.msra.mxu0 %v663_v7  ;;  %v675_v33 = vpack.c.bf16 %v62_v29, %v61_v28  ;;  %v63_v34 = vld [vmem:[%s1069_s1 + $0x60] sm:$0xff]  ;;  %v64_v35 = vld [vmem:[%s1069_s1 + $0x68] sm:$0xff]  ;;  %v696_v36 = vpack.c.bf16 %v146_v32, %v145_v31  ;;  %v147_v37 = vld [vmem:[%s1070_s2 + $0x50] sm:$0xff] }
  0x2f   :  { %665 = vmatprep.subr.bf16.mxu0 %v827_v0  ;;  %v148_v38 = vld [vmem:[%s1070_s2 + $0x58] sm:$0xff]  ;;  %v678_v39 = vpack.c.bf16 %v64_v35, %v63_v34  ;;  %v65_v40 = vld [vmem:[%s1069_s1 + $0x70] sm:$0xff]  ;;  %v149_v43 = vld [vmem:[%s1070_s2 + $0x60] sm:$0xff] }
  0x30   :  { %688 = vmatpush3.bf16.msra.mxu1 %v944_v18  ;;  %v66_v41 = vld [vmem:[%s1069_s1 + $0x78] sm:$0xff]  ;;  %v699_v42 = vpack.c.bf16 %v148_v38, %v147_v37  ;;  %v150_v44 = vld [vmem:[%s1070_s2 + $0x68] sm:$0xff]  ;;  %v151_v47 = vld [vmem:[%s1070_s2 + $0x70] sm:$0xff] }
  0x31   :  { %689 = vmatprep.subr.bf16.mxu1 %v827_v0  ;;  %v681_v45 = vpack.c.bf16 %v66_v41, %v65_v40  ;;  %v702_v46 = vpack.c.bf16 %v150_v44, %v149_v43  ;;  %v152_v48 = vld [vmem:[%s1070_s2 + $0x78] sm:$0xff]  ;;  %v1021_v49 = vld [vmem:[#allocation2] sm:$0xff]  ;;  %v156_v51 = vld [vmem:[#allocation5] sm:$0xff] }
  0x32   :  { %667 = vmatpush3.bf16.msra.mxu0 %v666_v14  ;;  %v705_v50 = vpack.c.bf16 %v152_v48, %v151_v47  ;;  %v157_v52 = vld [vmem:[#allocation5 + $0x8] sm:$0xff]  ;;  %v153_v62 = vld [vmem:[%s1071_s3] sm:$0xff]  ;;  %v154_v63 = vld [vmem:[%s1071_s3 + $0x8] sm:$0xff]  ;;  %s830_s3 = smov [#allocation7]  }
  0x33   :  { %668 = vmatprep.subr.bf16.mxu0 %v827_v0  ;;  %v708_v53 = vpack.c.bf16 %v157_v52, %v156_v51  ;;  %v482_v5 = vld [vmem:[%s1073_s5] ss:$0 sm:$0xff]  ;;  %s470_s13 = sshll.u32 %s830_s3, 4  ;;  %s471_s13 = int_to_ptr.vmem [resolvable:$true] %s470_s13 }
  0x34   :  { %691 = vmatpush3.bf16.msra.mxu1 %v961_v24  ;;  %s795_s14 = scalar_lea.vmem %s471_s13, 128  ;;  %p800_p3 = scmp.lt.s32.totalorder %s471_s13, %s471_s13 }
  0x35   :  { %692 = vmatprep.subr.bf16.mxu1 %v827_v0  ;;  %p796_p2 = scmp.ne.s32.totalorder %s471_s13, %s795_s14  ;;  %p801_p4 = scmp.lt.s32.totalorder %s795_s14, %s795_s14 }
  0x36   :  { %670 = vmatpush3.bf16.msra.mxu0 %v669_v21 }
  0x37   :  { %671 = vmatprep.subr.bf16.mxu0 %v827_v0  ;;  %p802_p5 = por %p801_p4, %p800_p3 }
  0x38   :  { %694 = vmatpush3.bf16.msra.mxu1 %v693_v30 }
  0x39   :  { %695 = vmatprep.subr.bf16.mxu1 %v827_v0  ;;  %p803_p6 = pnand %p802_p5, %p796_p2 }
  0x3a   :  { %673 = vmatpush3.bf16.msra.mxu0 %v672_v27 }
  0x3b   :  { %674 = vmatprep.subr.bf16.mxu0 %v827_v0 }
  0x3c   :  { %697 = vmatpush3.bf16.msra.mxu1 %v696_v36 }
  0x3d   :  { %698 = vmatprep.subr.bf16.mxu1 %v827_v0 }
  0x3e   :  { %676 = vmatpush3.bf16.msra.mxu0 %v675_v33 }
  0x3f   :  { %677 = vmatprep.subr.bf16.mxu0 %v827_v0 }
  0x40   :  { %700 = vmatpush3.bf16.msra.mxu1 %v699_v42 }
  0x41   :  { %701 = vmatprep.subr.bf16.mxu1 %v827_v0 }
  0x42   :  { %679 = vmatpush3.bf16.msra.mxu0 %v678_v39 }
  0x43   :  { %680 = vmatprep.subr.bf16.mxu0 %v827_v0 }
  0x44   :  { %703 = vmatpush3.bf16.msra.mxu1 %v702_v46 }
  0x45   :  { %704 = vmatprep.subr.bf16.mxu1 %v827_v0 }
  0x46   :  { %682 = vmatpush3.bf16.msra.mxu0 %v681_v45 }
  0x47   :  { %707 = vmatprep.subr.bf16.mxu0 %v827_v0 }
  0x48   :  { %706 = vmatpush3.bf16.msra.mxu1 %v705_v50 }
  0x49   :  { %573 = vmatmul.mubr.f32.vlgmr.msra.gmra.mrb[0].mxu0 %v1021_v49  ;;  %710 = vmatprep.subr.bf16.mxu1 %v827_v0 }
  0x4a   :  { %614 = vmatprep.mubr.msk.f32.mxu0 %vm828_vm0, %v829_v1  ;;  %709 = vmatpush3.bf16.msra.mxu0 %v708_v53 }
  0x4b   :  { %734 = vmatprep.subr.bf16.mxu0 %v827_v0 }
 0x11c   :  { %v133_v54 = vpop.f32.mrb[0].mxu0 }
 0x11d   :  { %v574_v55 = vpop.f32.mrb[1].mxu0  ;;  %608 = vmatmul.mubr.f32.vlgmr.msra.gmra.mrb[0].mxu1 %v133_v54 }
 0x11e   :  { %712 = vmatpush3.bf16.msra.mxu1 %v934_v15  ;;  %649 = vmatprep.mubr.msk.f32.mxu1 %vm828_vm0, %v829_v1 }
 0x11f   :  { %713 = vmatprep.subr.bf16.mxu1 %v827_v0 }
 0x122   :  { %715 = vmatpush3.bf16.msra.mxu1 %v944_v18 }
 0x123   :  { %716 = vmatprep.subr.bf16.mxu1 %v827_v0 }
 0x126   :  { %718 = vmatpush3.bf16.msra.mxu1 %v961_v24 }
 0x127   :  { %719 = vmatprep.subr.bf16.mxu1 %v827_v0 }
 0x12a   :  { %721 = vmatpush3.bf16.msra.mxu1 %v693_v30 }
 0x12b   :  { %722 = vmatprep.subr.bf16.mxu1 %v827_v0 }
 0x12e   :  { %724 = vmatpush3.bf16.msra.mxu1 %v696_v36 }
 0x12f   :  { %725 = vmatprep.subr.bf16.mxu1 %v827_v0 }
 0x132   :  { %727 = vmatpush3.bf16.msra.mxu1 %v699_v42 }
 0x133   :  { %728 = vmatprep.subr.bf16.mxu1 %v827_v0 }
 0x136   :  { %730 = vmatpush3.bf16.msra.mxu1 %v702_v46 }
 0x137   :  { %731 = vmatprep.subr.bf16.mxu1 %v827_v0  ;;  %v735_v0 = vpack.c.bf16 %v154_v63, %v153_v62 }
 0x13a   :  { %733 = vmatpush3.bf16.msra.mxu1 %v705_v50 }
 0x1f0   :  { %v224_v56 = vpop.f32.mrb[0].mxu1 }
 0x1f1   :  { %v609_v57 = vpop.f32.mrb[1].mxu1  ;;  %615 = vmatmul.mubr.msk.f32.vlgmr.msra.gmra.mrb[2].mxu0 %vm228_vm1, %v224_v56 }
 0x1f2   :  { %656 = vmatprep.mubr.msk.f32.mxu0 %vm828_vm0, %v829_v1  ;;  %736 = vmatpush3.bf16.msra.mxu0 %v735_v0 }
 0x2c4   :  { %v298_v58 = vpop.f32.mrb[2].mxu0 }
 0x2c5   :  { %v302_v59 = vsub.f32 %v133_v54, %v298_v58  ;;  %v616_v60 = vpop.f32.mrb[3].mxu0 }
 0x2c7   :  { %v303_v61 = vmul.f32 %v302_v59, %v302_v59 }
 0x2c9   :  { %650 = vmatmul.mubr.f32.vlgmr.msra.gmra.mrb[2].mxu1 %v303_v61 }
 0x39c   :  { %v370_v2 = vpop.f32.mrb[2].mxu1 }
 0x39d   :  { %v371_v3 = vadd.f32 1e-05, %v370_v2  ;;  %v651_v4 = vpop.f32.mrb[3].mxu1 }
 0x39f   :  { %745 = vrsqrt.f32 %v371_v3 }
 0x3a9   :  { %v746_v1 = vpop.eup %745 }
 0x3aa   :  { %657 = vmatmul.mubr.msk.f32.vlgmr.msra.gmra.mrb[4].mxu0 %vm228_vm1, %v746_v1 }
 0x47d   :  { %v444_v6 = vpop.f32.mrb[4].mxu0 }
 0x47e   :  { %v448_v7 = vmul.f32 %v444_v6, %v302_v59  ;;  %v658_v8 = vpop.f32.mrb[5].mxu0 }
 0x480   :  { %v455_v9 = vadd.f32 %v482_v5, %v448_v7 }
 0x482   :  { %v456_v10 = vsub.f32 0.0, %v455_v9 }
 0x484   :  { %v457_v11 = vmul.f32 1.442695, %v456_v10 }
 0x486   :  { %747 = vpow2.f32 %v457_v11 }
 0x490   :  { %v748_v12 = vpop.eup %747 }
 0x491   :  { %v459_v13 = vadd.f32 1.0, %v748_v12 }
 0x493   :  { %749 = vrcp.f32 %v459_v13 }
 0x49d   :  { %v750_v14 = vpop.eup %749 }
 0x49e   :  { %v462_v15 = vmul.f32 %v750_v14, %v1021_v49 }
 0x4a0   :  { %463 = vst [vmem:[#allocation7] sm:$0xff] %v462_v15 }
 0x4a1   :  { %806 = shalt.err (!%p803_p6)
}
 0x4a2   :  { %s807_s16 = scalar_lea.hbm %s1074_s6, 128 }
 0x4a3   :  { %p808_p7 = scmp.ne.s32.totalorder %s1074_s6, %s807_s16  ;;  %p811_p8 = scmp.lt.u32.totalorder %s807_s16, %s1074_s6 }
 0x4a5   :  { %p813_p9 = pnand %p811_p8, %p808_p7 }
 0x4a7   :  { %816 = shalt.err (!%p813_p9)
}
 0x4a8   :  { %473 = dma.vmem_to_hbm [thread:$0]  %s471_s13, 128, %s1074_s6, [#allocation4]  }
 0x4a9   :  { %821 = dma.done.wait [#allocation4], 128  }
 0x4aa   :  { %822 = vsyncadd [#allocation4], 4294967168 }
 0x4ab   :  { %477 = vsyncpa [#allocation3], 1 }
 0x4ac   :  { %478 = vsyncpa [#allocation6], 1 }
 0x4ad   :  { %479 = vsyncpa [#allocation4], 1 }

</bundles_post_ra>
